<compile_context>
chip_gen: v7x
topology: tpu7x:2x2x1
jax: 0.10.0
libtpu: 0.0.40
codegen_flags: <defaults>
</compile_context>

<pallas_src>
import math
import functools

import jax
import jax.numpy as jnp
from jax.experimental import pallas as pl
from jax.experimental.pallas import tpu as pltpu


# ---------------------------------------------------------------------------
# Kernel
# ---------------------------------------------------------------------------
def _arcface_kernel(iota_ref, label_ref, cos_ref, out_ref, *, cos_m, sin_m,
                    th, mm, scale, easy_margin, ls_eps, num_classes, rb,
                    clamp):
    # iota_ref : (1, block_c) int32  -- global class indices for this tile
    # label_ref: (block_b, 1) int32
    # cos_ref  : (block_b, block_c) native dtype
    # out_ref  : (block_b, block_c) out dtype
    col_ids = iota_ref[...]                       # loaded once per grid step
    block_b = cos_ref.shape[0]
    n_chunks = block_b // rb

    def compute_rows(rows):
        cos = cos_ref[rows, :].astype(jnp.float32)
        if clamp:
            cos_sq = jnp.minimum(cos * cos, 1.0)
        else:
            # matches torch.sqrt: NaN if |cos| > 1 from upstream rounding
            cos_sq = cos * cos
        sine = jnp.sqrt(1.0 - cos_sq)             # EUP (free slot)
        phi = cos * cos_m - sine * sin_m
        if easy_margin:
            phi = jnp.where(cos > 0.0, phi, cos)
        else:
            phi = jnp.where(cos > th, phi, cos - mm)

        # one-hot via comparison against the loaded global column indices
        one_hot = col_ids == label_ref[rows, :]   # (rb, block_c) bool

        if ls_eps > 0.0:
            off = ls_eps / num_classes
            oh = jnp.where(one_hot, 1.0 - ls_eps + off, off)
            out = cos + oh * (phi - cos)          # 1 sub + 1 mul + 1 add
        else:
            out = jnp.where(one_hot, phi, cos)
        out_ref[rows, :] = (out * scale).astype(out_ref.dtype)

    if n_chunks <= 1:
        compute_rows(pl.ds(0, block_b))
    else:
        # Bound the live f32 intermediates to one rb-row slab at a time.
        @pl.loop(0, n_chunks)
        def _(c):
            r0 = pl.multiple_of(c * rb, rb)
            compute_rows(pl.ds(r0, rb))


# ---------------------------------------------------------------------------
# Sizing helpers
# ---------------------------------------------------------------------------
def _round_up(x, m):
    return ((x + m - 1) // m) * m


def _choose_block(dim, max_block, align):
    """Full dim if it fits, else the largest multiple of `align` <= max_block."""
    if dim <= max_block:
        return dim
    return max(align, (max_block // align) * align)


def _row_chunk(block_b):
    """Rows per in-kernel compute slab (bounds f32 temporaries)."""
    for rb in (128, 64, 32, 16, 8):
        if rb <= block_b and block_b % rb == 0:
            return rb
    return block_b


def _vmem_capacity_bytes():
    try:
        info = pltpu.get_tpu_info()
        cap = getattr(info, "vmem_capacity_bytes", None)
        if cap:
            return int(cap)
    except Exception:
        pass
    return 64 * 1024 * 1024   # safe floor (v7x per-TC VMEM)


def _vmem_need_bytes(block_b, block_c, rb, in_itemsize, out_itemsize):
    bb = _round_up(block_b, 8)
    in_tile = bb * block_c * in_itemsize
    out_tile = bb * block_c * out_itemsize
    lbl_tile = bb * 128 * 4            # (block_b, 1) i32 pads to 128 lanes
    iota_tile = 8 * block_c * 4        # (1, block_c) i32 pads to 8 sublanes
    dbuf = 2 * (in_tile + out_tile + lbl_tile + iota_tile)   # double-buffered
    temps = 6 * rb * block_c * 4       # f32 intermediates per row slab
    return dbuf + temps


# ---------------------------------------------------------------------------
# Wrapper
# ---------------------------------------------------------------------------
def arcface_loss_forward(cosine, label, *, scale=30.0, margin=0.5,
                         easy_margin=False, ls_eps=0.0, out_dtype=jnp.float32,
                         clamp=False, block_b=None, block_c=None,
                         alias_input=False):
    """cosine: (B, C) float (any float dtype), label: (B,) int.

    Returns (B, C) `out_dtype` scaled logits (float32 by default, matching
    the PyTorch module which upcasts internally).
    """
    B, C = cosine.shape
    in_itemsize = jnp.dtype(cosine.dtype).itemsize
    out_itemsize = jnp.dtype(out_dtype).itemsize

    # dtype-aware sublane alignment: 8 for 32-bit, 16 for bf16, 32 for int8/fp8
    align_b = max(8, 32 // max(1, in_itemsize))

    cap = _vmem_capacity_bytes()
    budget = int(0.75 * cap)
    auto_blocks = block_b is None and block_c is None

    # Class tiles: 4096 when 128 MiB VMEM is available (v5e/v6e), else 2048.
    if block_c is None:
        block_c = _choose_block(C, 4096 if cap >= 96 * 1024 * 1024 else 2048, 128)
    if block_b is None:
        block_b = _choose_block(B, 512, align_b)
        rb = _row_chunk(block_b)
        while (block_b > align_b and
               _vmem_need_bytes(block_b, block_c, rb, in_itemsize,
                                out_itemsize) > budget):
            block_b = max(align_b, ((block_b // 2) // align_b) * align_b)
            rb = _row_chunk(block_b)
    rb = _row_chunk(block_b)

    # Megacore (v7x has 2 TCs): if everything fits one tile, split an axis so
    # the parallel grid has >=2 blocks.  Only when blocks were auto-chosen.
    if auto_blocks and pl.cdiv(B, block_b) * pl.cdiv(C, block_c) == 1:
        if B >= 2 * align_b:
            block_b = _round_up(-(-B // 2), align_b)
        elif C >= 256:
            block_c = _round_up(-(-C // 2), 128)
        rb = _row_chunk(block_b)

    cos_m = math.cos(margin)
    sin_m = math.sin(margin)
    th = math.cos(math.pi - margin)
    mm = math.sin(math.pi - margin) * margin

    label_col = label.astype(jnp.int32).reshape(B, 1)
    col_iota = jnp.arange(C, dtype=jnp.int32).reshape(1, C)

    kernel = functools.partial(
        _arcface_kernel, cos_m=cos_m, sin_m=sin_m, th=th, mm=mm, scale=scale,
        easy_margin=easy_margin, ls_eps=ls_eps, num_classes=C, rb=rb,
        clamp=clamp)
    # TODO(synk): the PyTorch module divides ls_eps by `self.out_features`
    # (never set in the reference); we use the number of classes C.

    # Grid: batch outer, classes INNERMOST -- the label block index (i, 0) is
    # then unchanged across class tiles so Pallas skips its redundant DMA.
    # Do not reorder these axes.
    grid = (pl.cdiv(B, block_b), pl.cdiv(C, block_c))

    need = _vmem_need_bytes(block_b, block_c, rb, in_itemsize, out_itemsize)
    vmem_limit = int(min(cap, max(need + (16 << 20), 48 << 20)))

    io_aliases = {}
    if alias_input and cosine.dtype == jnp.dtype(out_dtype):
        # inputs are (col_iota, label_col, cosine); alias cosine -> output 0.
        # Safe only because every output block depends solely on its matching
        # input block (purely elementwise, disjoint blocks).
        io_aliases = {2: 0}

    return pl.pallas_call(
        kernel,
        out_shape=jax.ShapeDtypeStruct((B, C), out_dtype),
        grid_spec=pltpu.PrefetchScalarGridSpec(
            num_scalar_prefetch=0,
            grid=grid,
            in_specs=[
                # global class indices for this class tile (tiny)
                pl.BlockSpec((1, block_c), lambda i, j: (0, j)),
                # label column: one (block_b, 1) slab per batch tile
                pl.BlockSpec((block_b, 1), lambda i, j: (i, 0)),
                # cosine tile over (batch, classes), native dtype
                pl.BlockSpec((block_b, block_c), lambda i, j: (i, j)),
            ],
            out_specs=pl.BlockSpec((block_b, block_c), lambda i, j: (i, j)),
        ),
        compiler_params=pltpu.CompilerParams(
            dimension_semantics=("parallel", "parallel"),
            vmem_limit_bytes=vmem_limit),
        input_output_aliases=io_aliases,
    )(col_iota, label_col, cosine)


# ---------------------------------------------------------------------------
# Pure-JAX reference (mirrors the PyTorch module)
# ---------------------------------------------------------------------------
def _reference(cosine, label, *, scale=30.0, margin=0.5, easy_margin=False,
               ls_eps=0.0):
    cos = cosine.astype(jnp.float32)
    sine = jnp.sqrt(1.0 - cos ** 2)
    phi = cos * math.cos(margin) - sine * math.sin(margin)
    if easy_margin:
        phi = jnp.where(cos > 0, phi, cos)
    else:
        th = math.cos(math.pi - margin)
        mm = math.sin(math.pi - margin) * margin
        phi = jnp.where(cos > th, phi, cos - mm)
    one_hot = jax.nn.one_hot(label, cos.shape[1], dtype=jnp.float32)
    if ls_eps > 0:
        one_hot = (1.0 - ls_eps) * one_hot + ls_eps / cos.shape[1]
    out = one_hot * phi + (1.0 - one_hot) * cos
    return out * scale


if __name__ == "__main__":
    key = jax.random.PRNGKey(0)
    k1, k2, k3, k4 = jax.random.split(key, 4)

    # --- primary check: small f32, auto tiling (exercises megacore split) ---
    B, C = 8, 256
    cosine = jax.random.uniform(k1, (B, C), dtype=jnp.float32,
                                minval=-1.0, maxval=1.0)
    label = jax.random.randint(k2, (B,), 0, C, dtype=jnp.int32)

    out = jax.block_until_ready(arcface_loss_forward(cosine, label))
    ref = _reference(cosine, label)
    assert out.shape == (B, C) and out.dtype == jnp.float32
    assert jnp.allclose(out, ref, atol=1e-5, rtol=1e-5), "mismatch (f32)"

    # --- bf16 input, multi-tile grid with remainder class tile, ls_eps +
    #     easy_margin, dtype-aligned explicit blocks ---
    B2, C2 = 32, 384
    cos2 = jax.random.uniform(k3, (B2, C2), dtype=jnp.float32,
                              minval=-1.0, maxval=1.0).astype(jnp.bfloat16)
    lab2 = jax.random.randint(k4, (B2,), 0, C2, dtype=jnp.int32)
    out2 = jax.block_until_ready(
        arcface_loss_forward(cos2, lab2, ls_eps=0.1, easy_margin=True,
                             block_b=16, block_c=256))
    ref2 = _reference(cos2, lab2, ls_eps=0.1, easy_margin=True)
    assert out2.shape == (B2, C2) and out2.dtype == jnp.float32
    assert jnp.allclose(out2, ref2, atol=1e-2, rtol=1e-2), "mismatch (bf16 in)"

    # --- optional bf16 output (byte-reduction path for mem-bound chips) ---
    out3 = jax.block_until_ready(
        arcface_loss_forward(cosine, label, out_dtype=jnp.bfloat16))
    assert out3.dtype == jnp.bfloat16
    assert jnp.allclose(out3.astype(jnp.float32), ref, atol=5e-2, rtol=5e-2), \
        "mismatch (bf16 out)"

    print("KERNEL_OK")
</pallas_src>

<mosaic_0001>
module attributes {stable_mosaic.version = 11 : i64} {
  func.func @_arcface_kernel(%arg0: i32, %arg1: i32, %arg2: memref<1x128xi32, #tpu.memory_space<vmem>>, %arg3: memref<8x1xi32, #tpu.memory_space<vmem>>, %arg4: memref<8x128xf32, #tpu.memory_space<vmem>>, %arg5: memref<8x128xf32, #tpu.memory_space<vmem>>) attributes {dimension_semantics = [#tpu.dimension_semantics<parallel>, #tpu.dimension_semantics<parallel>], iteration_bounds = array<i64: 1, 2>, scalar_prefetch = 0 : i64, scratch_operands = 0 : i64, tpu.core_type = #tpu.core_type<tc>, window_params = [{transform_indices = @transform_0, window_bounds = array<i64: 1, 128>}, {transform_indices = @transform_1, window_bounds = array<i64: 8, 1>}, {transform_indices = @transform_2, window_bounds = array<i64: 8, 128>}, {transform_indices = @transform_3, window_bounds = array<i64: 8, 128>}]} {
    %c0 = arith.constant 0 : index
    %c0_0 = arith.constant 0 : index
    %0 = vector.load %arg2[%c0, %c0_0] : memref<1x128xi32, #tpu.memory_space<vmem>>, vector<1x128xi32>
    %c0_1 = arith.constant 0 : index
    %c0_2 = arith.constant 0 : index
    %1 = vector.load %arg4[%c0_1, %c0_2] : memref<8x128xf32, #tpu.memory_space<vmem>>, vector<8x128xf32>
    %2 = arith.mulf %1, %1 : vector<8x128xf32>
    %cst = arith.constant 1.000000e+00 : f32
    %3 = vector.broadcast %cst : f32 to vector<8x128xf32>
    %4 = arith.subf %3, %2 : vector<8x128xf32>
    %5 = math.sqrt %4 : vector<8x128xf32>
    %cst_3 = arith.constant 0.87758255 : f32
    %6 = vector.broadcast %cst_3 : f32 to vector<8x128xf32>
    %7 = arith.mulf %1, %6 : vector<8x128xf32>
    %cst_4 = arith.constant 0.47942555 : f32
    %8 = vector.broadcast %cst_4 : f32 to vector<8x128xf32>
    %9 = arith.mulf %5, %8 : vector<8x128xf32>
    %10 = arith.subf %7, %9 : vector<8x128xf32>
    %cst_5 = arith.constant -0.87758255 : f32
    %11 = vector.broadcast %cst_5 : f32 to vector<8x128xf32>
    %12 = arith.cmpf ogt, %1, %11 : vector<8x128xf32>
    %cst_6 = arith.constant 0.239712775 : f32
    %13 = vector.broadcast %cst_6 : f32 to vector<8x128xf32>
    %14 = arith.subf %1, %13 : vector<8x128xf32>
    %15 = arith.select %12, %10, %14 : vector<8x128xi1>, vector<8x128xf32>
    %c0_7 = arith.constant 0 : index
    %c0_8 = arith.constant 0 : index
    %16 = vector.load %arg3[%c0_7, %c0_8] : memref<8x1xi32, #tpu.memory_space<vmem>>, vector<8x1xi32>
    %17 = vector.broadcast %0 : vector<1x128xi32> to vector<8x128xi32>
    %18 = vector.broadcast %16 : vector<8x1xi32> to vector<8x128xi32>
    %19 = arith.cmpi eq, %17, %18 : vector<8x128xi32>
    %20 = arith.select %19, %15, %1 : vector<8x128xi1>, vector<8x128xf32>
    %cst_9 = arith.constant 3.000000e+01 : f32
    %21 = vector.broadcast %cst_9 : f32 to vector<8x128xf32>
    %22 = arith.mulf %20, %21 : vector<8x128xf32>
    %c0_10 = arith.constant 0 : index
    %c0_11 = arith.constant 0 : index
    %23 = vector.load %arg5[%c0_10, %c0_11] : memref<8x128xf32, #tpu.memory_space<vmem>>, vector<8x128xf32>
    tpu.vector_store %arg5[%c0_10, %c0_11], %22 {strides = array<i32>} : memref<8x128xf32, #tpu.memory_space<vmem>>, vector<8x128xf32>,
    return
  }
  func.func @transform_0(%arg0: i32, %arg1: i32) -> (i32, i32) {
    %c0_i32 = arith.constant 0 : i32
    %c0_i32_0 = arith.constant 0 : i32
    return %c0_i32, %arg1 : i32, i32
  }
  func.func @transform_1(%arg0: i32, %arg1: i32) -> (i32, i32) {
    %c0_i32 = arith.constant 0 : i32
    %c0_i32_0 = arith.constant 0 : i32
    return %arg0, %c0_i32 : i32, i32
  }
  func.func @transform_2(%arg0: i32, %arg1: i32) -> (i32, i32) {
    %c0_i32 = arith.constant 0 : i32
    return %arg0, %arg1 : i32, i32
  }
  func.func @transform_3(%arg0: i32, %arg1: i32) -> (i32, i32) {
    %c0_i32 = arith.constant 0 : i32
    return %arg0, %arg1 : i32, i32
  }
}

</mosaic_0001>

<bundles_post_ra>
// kernel: tpu_custom_call.1
= control target key start
LH: loop header
LB: loop body
LE: loop exit
PB: predicated region body
PF: predicated region fallthrough
CT: control target
= control target key end

     0   :  { %8 = vsyncpa [#allocation3], 0  ;;  %s799_s0 = inlined_call_operand.hbm [shape: s32[1,256], index: 0, kind: input, shape index: {}]   ;;  %s800_s1 = inlined_call_operand.vmem [shape: s32[8,1], index: 1, kind: input, shape index: {}]   ;;  %s801_s2 = inlined_call_operand.vmem [shape: f32[8,256], index: 2, kind: input, shape index: {}]   ;;  %s802_s3 = inlined_call_operand.hbm [shape: f32[8,256], index: 3, kind: output, shape index: {}]  }
   0x1   :  { %10 = vsyncpa [#allocation3 + $0x1], 0 }
   0x2   :  { %11 = vsyncpa [#allocation4], 0 }
   0x3   :  { %13 = vsyncpa [#allocation4 + $0x1], 0  ;;  %s618_s12 = smov 0   ;;  %s620_s13 = smov 0  }
   0x4   :  { %s622_s14 = smov 0   ;;  %s624_s15 = smov 0  }
   0x5   :  { %s626_s16 = smov 0   ;;  %s628_s17 = smov 0  }
   0x6 LB: > { %s400_s18 = sadd.s32 4294967295, %s593_s17   ;;  %s401_s19 = sadd.s32 4294967294, %s593_s17   ;;  %s593_s17 = sphi %s628_s17, %s19_s17   ;;  %s589_s16 = sphi %s626_s16, %s818_s16   ;;  %s585_s15 = sphi %s624_s15, %s817_s15   ;;  %s581_s14 = sphi %s622_s14, %s816_s14   ;;  %s577_s13 = sphi %s620_s13, %s815_s13   ;;  %s573_s12 = sphi %s618_s12, %s814_s12  }
   0x7   : > { %s28_s20 = sadd.s32 1, %s589_s16  ;;  %s38_s21 = sadd.s32 1, %s581_s14 }
   0x8   : > { %p29_p0 = scmp.ge.s32.totalorder %s28_s20, 2  ;;  %p45_p1 = scmp.ne.s32.totalorder %s581_s14, %s577_s13 }
   0x9   : > { %p46_p2 = scmp.eq.s32.totalorder %s593_s17, 0  ;;  %p51_p3 = scmp.ne.s32.totalorder %s577_s13, %s573_s12 }
   0xa   : > { %s820_s20 = smov (%p29_p0, %s28_s20), 0  ;;  %p52_p5 = scmp.eq.s32.totalorder %s400_s18, 0 }
   0xb   : > { %p659_p4 = por %p46_p2, %p45_p1  ;;  %s35_s23 = ssub.s32 %s589_s16, %s820_s20 }
   0xc   : > { %p131_p6 = scmp.eq.s32.totalorder %s400_s18, 1  ;;  %p36_p7 = scmp.eq.s32.totalorder %s35_s23, 0 }
   0xd   : > { %p665_p8 = por %p52_p5, %p51_p3  ;;  %p137_p10 = scmp.eq.s32.totalorder %s401_s19, 1 }
   0xe   : > { %p669_p9 = por %p131_p6, %p45_p1  ;;  %p427_p13 = scmp.lt.s32.totalorder %s593_s17, 2 }
   0xf   : > { %s674_s26 = scalar_select %p36_p7, %s581_s14, %s38_s21  }
  0x10   : > { %s806_s25 = scalar_select %p669_p9, 1, 0 }
  0x11   : > { %p676_p11 = por %p137_p10, %p51_p3  ;;  %s164_s28 = sand.u32 1, %s581_s14  }
  0x12   : > { %s405_s29 = sshll.u32 %s589_s16, 4  ;;  %s167_s30 = scalar_lea.vmem [#allocation2], %s164_s28 }
  0x13   : > { %s807_s27 = scalar_select %p676_p11, 1, 0 }
  0x14   : > { %s174_s4 = sshll.u32 %s167_s30, 4  ;;  %s687_s7 = scalar_lea.hbm %s799_s0, %s405_s29  ;;  %s689_s4 = int_to_ptr.vmem [resolvable:$true] %s174_s4 }
  0x15   : > { %p693_p0 = pnand %p427_p13, %p659_p4  ;;  %s165_s9 = scalar_lea.sflag [#allocation3], %s164_s28 }
  0x16   : > { %s481_s10 = scalar_lea.hbm %s687_s7, 16  ;;  %s486_s19 = scalar_lea.hbm %s799_s0, 32 }
  0x17   : > { %p482_p3 = scmp.ne.s32.totalorder %s687_s7, %s481_s10  ;;  %p483_p5 = pneg %p693_p0 }
  0x18   : > { %p487_p4 = scmp.lt.u32.totalorder %s687_s7, %s799_s0  ;;  %p488_p10 = scmp.lt.u32.totalorder %s486_s19, %s481_s10 }
  0x19   : > { %p484_p6 = pnand %p483_p5, %p482_p3  ;;  %p490_p12 = scmp.lt.u32.totalorder %s481_s10, %s687_s7 }
  0x1a   : > { %p489_p13 = por %p488_p10, %p487_p4 }
  0x1b   : > { %p485_p7 = pneg %p484_p6 }
  0x1c   : > { %p491_p1 = por %p490_p12, %p489_p13 }
  0x1e   : > { %p492_p2 = pnand %p491_p1, %p485_p7 }
  0x20   : > { %495 = shalt.err (!%p492_p2)
}
  0x21   : > { %s496_s23 = scalar_lea.vmem %s689_s4, 16  ;;  %s595_s28 = smov [#allocation2]  }
  0x22   : > { %p497_p3 = scmp.ne.s32.totalorder %s689_s4, %s496_s23  ;;  %s501_s29 = sshll.u32 %s595_s28, 4  ;;  %s502_s29 = int_to_ptr.vmem [resolvable:$false] %s501_s29 }
  0x23   : > { %s503_s30 = scalar_lea.vmem %s502_s29, 32  ;;  %p504_p9 = scmp.lt.s32.totalorder %s689_s4, %s502_s29 }
  0x24   : > { %p499_p6 = pnand %p497_p3, %p483_p5  ;;  %p505_p4 = scmp.lt.s32.totalorder %s503_s30, %s496_s23 }
  0x26   : > { %p500_p11 = pneg %p499_p6  ;;  %p506_p10 = por %p505_p4, %p504_p9 }
  0x28   : > { %p507_p12 = pnand %p506_p10, %p500_p11 }
  0x2a   : > { %510 = shalt.err (!%p507_p12)
}
  0x2b   : > { %422 = dma.hbm_to_vmem [thread:$0]  (!%p693_p0), %s687_s7, 16, %s689_s4, %s165_s9  }
  0x2c   : > { %p809_p1 = scmp.lt.s32.totalorder %s593_s17, 3  ;;  %p810_p2 = scmp.ge.s32.totalorder %s593_s17, 1 }
  0x2e   : > { %p191_p5 = pnand %p810_p2, %p809_p1 }
  0x2f   : > { %s729_s5 = sand.u32 (!%p191_p5), 1, %s577_s13  }
  0x30   : > { %194 = sbr.rel (%p191_p5) target bundleno = 204 (0xcc), region = 32  ;;  %s197_s6 = scalar_lea.sflag (!%p191_p5), [#allocation3], %s729_s5 }
  0x31   : > { %s199_s10 = scalar_lea.vmem (!%p191_p5), [#allocation2], %s729_s5 }
  0x37   : > { %564 = dma.done.wait (%p665_p8), %s197_s6, 16  }
  0x38   : > { %566 = vsyncadd (%p665_p8), %s197_s6, 4294967280  ;;  %v596_v0 = vmov 0   ;;  %v262_v1 = vld [vmem:[%s800_s1] sm:$0xff]  ;;  %p239_p9 = scmp.lt.s32.totalorder %s585_s15, 1  ;;  %s407_s24 = sshll.u32 %s729_s5, 3 }
  0x39   : > { %478 = vset.pattern.permute.xlu0 %v596_v0  ;;  %v410_v14 = vld [vmem:[%s199_s10] ss:$0 sm:$0xff]  ;;  %s412_s21 = sshll.u32 %s585_s15, 7  ;;  %s232_s22 = scalar_lea.vmem [#allocation5], %s407_s24 }
  0x3a   : > { %268 = vperm.xlu0 %478, %v262_v1   ;;  %s240_s8 = scalar_select %p239_p9, %s585_s15, 1 }
  0x3b   : > { %s290_s23 = sshll.u32 %s232_s22, 4  ;;  %s750_s30 = scalar_lea.hbm %s802_s3, %s412_s21  ;;  %s752_s23 = int_to_ptr.vmem [resolvable:$true] %s290_s23 }
  0x3c   : > { %s408_s9 = sshll.u32 %s240_s8, 3  ;;  %s275_s6 = scalar_lea.sflag [#allocation4], %s729_s5 }
  0x3d   : > { %s244_s19 = scalar_lea.vmem %s801_s2, %s408_s9  ;;  %s511_s10 = scalar_lea.vmem %s752_s23, 128 }
  0x3e   : > { %v246_v2 = vld [vmem:[%s244_s19] sm:$0xff]  ;;  %p512_p8 = scmp.ne.s32.totalorder %s752_s23, %s511_s10  ;;  %p811_p11 = scmp.ne.s32.totalorder %s806_s25, 0 }
  0x3f   : > { %v247_v3 = vmul.f32 %v246_v2, %v246_v2  ;;  %v256_v10 = vmul.f32 0.87758255, %v246_v2  ;;  %v409_v13 = vadd.f32 -0.23971277, %v246_v2  ;;  %vm259_vm2 = vcmp.gt.f32.partialorder %v246_v2, -0.87758255 }
  0x40   : > { %p513_p0 = pnand %p512_p8, %p811_p11  ;;  %s597_s15 = smov [#allocation5]  }
  0x41   : > { %v248_v4 = vsub.f32 1.0, %v247_v3  ;;  %s515_s4 = sshll.u32 %s597_s15, 4  ;;  %s516_s4 = int_to_ptr.vmem [resolvable:$false] %s515_s4 }
  0x42   : > { %p514_p7 = pneg %p513_p0  ;;  %s517_s7 = scalar_lea.vmem %s516_s4, 256 }
  0x43   : > { %479 = vrsqrt.f32 %v248_v4  ;;  %vm251_vm0 = vcmp.eq.f32.partialorder %v248_v4, inf  ;;  %v254_v7 = vand.u32 2147483648, %v248_v4  ;;  %vm253_vm1 = vcmp.eq.f32.partialorder %v248_v4, 0.0  ;;  %p518_p13 = scmp.lt.s32.totalorder %s752_s23, %s516_s4  ;;  %p519_p3 = scmp.lt.s32.totalorder %s517_s7, %s511_s10 }
  0x45   : > { %p520_p6 = por %p519_p3, %p518_p13 }
  0x47   : > { %p521_p4 = pnand %p520_p6, %p514_p7 }
  0x4d   : > { %v480_v5 = vpop.eup %479 }
  0x4e   : > { %v250_v6 = vmul.f32 %v480_v5, %v248_v4 }
  0x50   : > { %v252_v8 = vsel %vm251_vm0, %v248_v4, %v250_v6 }
  0x51   : > { %v255_v9 = vsel %vm253_vm1, %v254_v7, %v252_v8 }
  0x52   : > { %v257_v11 = vmul.f32 0.47942555, %v255_v9 }
  0x54   : > { %v258_v12 = vsub.f32 %v256_v10, %v257_v11 }
  0x56   : > { %v261_v15 = vsel %vm259_vm2, %v258_v12, %v409_v13 }
  0xb9   : > { %v269_v16 = vpop.permute.xlu0 %268 }
  0xba   : > { %vm270_vm3 = vcmp.eq.s32.totalorder %v410_v14, %v269_v16 }
  0xbb   : > { %v271_v17 = vsel %vm270_vm3, %v261_v15, %v246_v2 }
  0xbc   : > { %v272_v18 = vmul.f32 30.0, %v271_v17 }
  0xbe   : > { %273 = vst [vmem:[%s232_s22] sm:$0xff] %v272_v18 }
  0xbf   : > { %524 = shalt.err (!%p521_p4)
}
  0xc0   : > { %s525_s5 = scalar_lea.hbm %s750_s30, 128  ;;  %s529_s11 = scalar_lea.hbm %s802_s3, 256 }
  0xc1   : > { %p526_p10 = scmp.ne.s32.totalorder %s750_s30, %s525_s5  ;;  %p530_p2 = scmp.lt.u32.totalorder %s750_s30, %s802_s3 }
  0xc2   : > { %p531_p5 = scmp.lt.u32.totalorder %s529_s11, %s525_s5  ;;  %p533_p8 = scmp.lt.u32.totalorder %s525_s5, %s750_s30 }
  0xc3   : > { %p527_p12 = pnand %p526_p10, %p811_p11 }
  0xc4   : > { %p532_p9 = por %p531_p5, %p530_p2 }
  0xc5   : > { %p528_p1 = pneg %p527_p12 }
  0xc6   : > { %p534_p0 = por %p533_p8, %p532_p9 }
  0xc8   : > { %p535_p7 = pnand %p534_p0, %p528_p1 }
  0xca   : > { %538 = shalt.err (!%p535_p7)
}
  0xcb   : > { %417 = dma.vmem_to_hbm [thread:$0]  (%p811_p11), %s752_s23, 128, %s750_s30, %s275_s6  }
  0xcc PF: > { %s302_s24 = sand.u32 1, %s573_s12   ;;  %p812_p13 = scmp.ne.s32.totalorder %s807_s27, 0 }
  0xcd   : > { %p813_p3 = scmp.ge.s32.totalorder %s593_s17, 2  ;;  %s303_s21 = scalar_lea.sflag [#allocation4], %s302_s24 }
  0xcf   : > { %p424_p6 = pnand %p813_p3, %p812_p13 }
  0xd1   : > { %568 = dma.done.wait (!%p424_p6), %s303_s21, 128  }
  0xd2   : > { %570 = vsyncadd (!%p424_p6), %s303_s21, 4294967168  ;;  %s19_s17 = sadd.s32 1, %s593_s17   ;;  %s814_s12 = smov %s577_s13 }
  0xd3   : > { %p16_p4 = scmp.ge.s32.totalorder %s19_s17, 4   ;;  %s815_s13 = smov %s581_s14 }
  0xd4   : > { %s816_s14 = smov %s674_s26  ;;  %s817_s15 = smov %s589_s16 }
  0xd5   : > { %s818_s16 = smov %s820_s20  ;;  %18 = sbr.rel (!%p16_p4) target bundleno = 6 (0x6), region = 83 }
  0xdc   :  { %308 = vsyncpa [#allocation3], 1 }
  0xdd   :  { %310 = vsyncpa [#allocation3 + $0x1], 1 }
  0xde   :  { %311 = vsyncpa [#allocation4], 1 }
  0xdf   :  { %313 = vsyncpa [#allocation4 + $0x1], 1 }

</bundles_post_ra>
